<compile_context>
chip_gen: v6e
topology: v6e:2x2x1
jax: 0.10.0
libtpu: 0.0.40
codegen_flags: <defaults>
</compile_context>

<pallas_src>
import jax
import jax.numpy as jnp
from jax.experimental import pallas as pl
from jax.experimental.pallas import tpu as pltpu


def _make_kernel(T, tT, n_t_inner):
    def kernel(t_ref, a_ref, x_ref, ce_ref, wr_ref):
        """One (batch, time-chunk, time-tile) grid step.

        t_ref : (1, 1, tT)  int32   target class ids for this time tile
        a_ref : (1, C, 1)   f32     per-sequence allowed-class mask
        x_ref : (1, C, tT)  logits  native NCT layout (class on sublanes, time on lanes)
        ce_ref, wr_ref : (1, 1, tT) f32 lane-parallel accumulators
                         (resident across the innermost "arbitrary" axis)
        """
        ti = pl.program_id(2)

        @pl.when(ti == 0)
        def _():
            ce_ref[...] = jnp.zeros_like(ce_ref)
            wr_ref[...] = jnp.zeros_like(wr_ref)

        logits = x_ref[0].astype(jnp.float32)            # (C, tT)
        tgt = t_ref[0]                                   # (1, tT) int32
        allowed = a_ref[0]                               # (C, 1)  f32

        # Numerically-stable softmax pieces; reductions only over the class
        # (sublane) axis -> per-lane (1, tT) results, no cross-lane XLU work.
        m = jnp.max(logits, axis=0, keepdims=True)       # (1, tT)
        z = logits - m                                   # (C, tT)
        e = jnp.exp(z)                                   # (C, tT)   EUP
        s = jnp.sum(e, axis=0, keepdims=True)            # (1, tT)

        # Target logit via iota select (no dynamic gather, no cast+mul pair).
        class_ids = jax.lax.broadcasted_iota(jnp.int32, logits.shape, 0)
        z_tgt = jnp.sum(jnp.where(class_ids == tgt, z, 0.0),
                        axis=0, keepdims=True)           # (1, tT)
        ce_lane = jnp.log(s) - z_tgt                     # (1, tT)

        # Disallowed softmax mass computed directly (no catastrophic cancellation).
        disallowed = jnp.sum(e * (1.0 - allowed), axis=0, keepdims=True)
        wrong_lane = disallowed / s                      # (1, tT)

        # Mask lanes past the end of the sequence (partial trailing tile).
        lane = jax.lax.broadcasted_iota(jnp.int32, (1, tT), 1)
        start = (pl.program_id(1) * n_t_inner + ti) * tT
        valid = (start + lane) < T
        ce_ref[...] += jnp.where(valid, ce_lane, 0.0)[None]
        wr_ref[...] += jnp.where(valid, wrong_lane, 0.0)[None]

    return kernel


def _vmem_capacity_bytes():
    try:
        return int(pltpu.get_tpu_info().vmem_capacity_bytes)
    except Exception:
        return 64 * 1024 * 1024      # conservative fallback (v7x per-TensorCore)


def _pick_time_tile(T, C, itemsize, max_time_tile=None):
    """Largest lane-aligned time tile whose logits block fits ~VMEM/8."""
    vmem = _vmem_capacity_bytes()
    block_budget = vmem // 8          # ~16 MiB on v5e/v6e, ~8 MiB on v7x
    tT = (block_budget // (C * itemsize)) // 128 * 128
    tT = max(tT, 128)
    if max_time_tile is not None:
        tT = max(128, min(tT, (max_time_tile // 128) * 128))
    if tT >= T:
        tT = T                        # single full-extent block (always layout-legal)
    return tT, vmem


def forced_alignment_loss(predictions, targets, *, max_time_tile=None):
    """predictions: (B, C, T) logits (f32 or bf16, PyTorch NCT). targets: (B, T) int."""
    B, C, T = predictions.shape
    t_i32 = targets.astype(jnp.int32)
    itemsize = jnp.dtype(predictions.dtype).itemsize

    # Tiny (B, C, 1) "class occurs in this sequence" mask, built outside the kernel
    # so the (large) time axis can be tiled freely inside it.
    allowed = jnp.zeros((B, C), jnp.float32).at[
        jnp.arange(B)[:, None], t_i32].set(1.0)[:, :, None]

    tgt3 = t_i32.reshape(B, 1, T)                        # time on the lane axis

    tT, vmem = _pick_time_tile(T, C, itemsize, max_time_tile)
    n_t = pl.cdiv(T, tT)

    # Megacore: B is the naturally parallel axis; if B == 1, split the time tiles
    # into two parallel chunks so a second TensorCore (v7x) gets work.
    n_chunks = 2 if (B == 1 and n_t >= 2 and n_t % 2 == 0) else 1
    n_t_inner = n_t // n_chunks

    block_bytes = C * tT * itemsize
    vmem_limit = int(min(vmem, max(32 * 1024 * 1024,
                                   3 * block_bytes + 16 * 1024 * 1024)))

    kernel = _make_kernel(T, tT, n_t_inner)

    ce_part, wr_part = pl.pallas_call(
        kernel,
        out_shape=(
            jax.ShapeDtypeStruct((B * n_chunks, 1, tT), jnp.float32),
            jax.ShapeDtypeStruct((B * n_chunks, 1, tT), jnp.float32),
        ),
        grid_spec=pltpu.PrefetchScalarGridSpec(
            num_scalar_prefetch=0,
            grid=(B, n_chunks, n_t_inner),
            in_specs=[
                pl.BlockSpec((1, 1, tT),
                             lambda b, c, t: (b, 0, c * n_t_inner + t)),   # targets
                pl.BlockSpec((1, C, 1), lambda b, c, t: (b, 0, 0)),        # allowed
                pl.BlockSpec((1, C, tT),
                             lambda b, c, t: (b, 0, c * n_t_inner + t)),   # logits
            ],
            out_specs=[
                pl.BlockSpec((1, 1, tT), lambda b, c, t: (b * n_chunks + c, 0, 0)),
                pl.BlockSpec((1, 1, tT), lambda b, c, t: (b * n_chunks + c, 0, 0)),
            ],
        ),
        compiler_params=pltpu.CompilerParams(
            dimension_semantics=("parallel", "parallel", "arbitrary"),
            vmem_limit_bytes=vmem_limit,
        ),
    )(tgt3, allowed, predictions)

    n = jnp.float32(B * T)
    loss_chord = jnp.sum(ce_part) / n
    loss_wrong = jnp.sum(wr_part) / n
    return loss_chord + 2.0 * loss_wrong


def _reference_loss(predictions, targets):
    """Pure-JAX reference mirroring the PyTorch semantics (for verification)."""
    B, C, T = predictions.shape
    x = jnp.transpose(predictions, (0, 2, 1)).astype(jnp.float32)   # (B, T, C)
    log_sm = jax.nn.log_softmax(x, axis=-1)
    sm = jax.nn.softmax(x, axis=-1)
    onehot = jax.nn.one_hot(targets, C, dtype=jnp.float32)          # (B, T, C)
    loss_chord = -jnp.mean(jnp.sum(log_sm * onehot, axis=-1))
    allowed = jnp.max(onehot, axis=1, keepdims=True)                # (B, 1, C)
    loss_wrong = jnp.mean(jnp.sum(sm * (1.0 - allowed), axis=-1))
    return loss_chord + 2.0 * loss_wrong


if __name__ == "__main__":
    key = jax.random.PRNGKey(0)

    # Case 1: small shapes consistent with the module (single-tile path).
    k1, k2, key = jax.random.split(key, 3)
    B, C, T = 2, 32, 16
    preds = jax.random.normal(k1, (B, C, T), dtype=jnp.float32)
    tgts = jax.random.randint(k2, (B, T), 0, C, dtype=jnp.int32)
    out = jax.block_until_ready(forced_alignment_loss(preds, tgts))
    ref = _reference_loss(preds, tgts)
    assert jnp.allclose(out, ref, rtol=1e-4, atol=1e-4), (out, ref)

    # Case 2: multi-tile accumulation + parallel time-chunk (B == 1) + ragged tail.
    k1, k2, key = jax.random.split(key, 3)
    B, C, T = 1, 48, 1000
    preds = jax.random.normal(k1, (B, C, T), dtype=jnp.float32)
    tgts = jax.random.randint(k2, (B, T), 0, C, dtype=jnp.int32)
    out = jax.block_until_ready(
        forced_alignment_loss(preds, tgts, max_time_tile=256))
    ref = _reference_loss(preds, tgts)
    assert jnp.allclose(out, ref, rtol=1e-4, atol=1e-4), (out, ref)

    # Case 3: bf16 logits accepted as-is (no wrapper upcast copy), multi-tile, B > 1.
    k1, k2, key = jax.random.split(key, 3)
    B, C, T = 2, 32, 256
    preds = jax.random.normal(k1, (B, C, T), dtype=jnp.float32)
    tgts = jax.random.randint(k2, (B, T), 0, C, dtype=jnp.int32)
    preds_bf16 = preds.astype(jnp.bfloat16)
    out = jax.block_until_ready(
        forced_alignment_loss(preds_bf16, tgts, max_time_tile=128))
    ref = _reference_loss(preds_bf16.astype(jnp.float32), tgts)
    assert jnp.allclose(out, ref, rtol=1e-3, atol=1e-3), (out, ref)

    print("KERNEL_OK")
</pallas_src>

<mosaic_0001>
module attributes {stable_mosaic.version = 11 : i64} {
  func.func @kernel(%arg0: i32, %arg1: i32, %arg2: i32, %arg3: memref<1x1x16xi32, #tpu.memory_space<vmem>>, %arg4: memref<1x32x1xf32, #tpu.memory_space<vmem>>, %arg5: memref<1x32x16xf32, #tpu.memory_space<vmem>>, %arg6: memref<1x1x16xf32, #tpu.memory_space<vmem>>, %arg7: memref<1x1x16xf32, #tpu.memory_space<vmem>>) attributes {dimension_semantics = [#tpu.dimension_semantics<parallel>, #tpu.dimension_semantics<parallel>, #tpu.dimension_semantics<arbitrary>], iteration_bounds = array<i64: 2, 1, 1>, scalar_prefetch = 0 : i64, scratch_operands = 0 : i64, tpu.core_type = #tpu.core_type<tc>, window_params = [{transform_indices = @transform_0, window_bounds = array<i64: 1, 1, 16>}, {transform_indices = @transform_1, window_bounds = array<i64: 1, 32, 1>}, {transform_indices = @transform_2, window_bounds = array<i64: 1, 32, 16>}, {transform_indices = @transform_3, window_bounds = array<i64: 1, 1, 16>}, {transform_indices = @transform_4, window_bounds = array<i64: 1, 1, 16>}]} {
    %c0_i32 = arith.constant 0 : i32
    %0 = arith.cmpi eq, %arg2, %c0_i32 : i32
    %1 = arith.extui %0 : i1 to i32
    %c0_i32_0 = arith.constant 0 : i32
    %2 = arith.cmpi ne, %1, %c0_i32_0 : i32
    scf.if %2 {
      %cst_29 = arith.constant 0.000000e+00 : f32
      %52 = vector.broadcast %cst_29 : f32 to vector<1x1x16xf32>
      %c0_30 = arith.constant 0 : index
      %c0_31 = arith.constant 0 : index
      %c0_32 = arith.constant 0 : index
      %53 = vector.load %arg6[%c0_30, %c0_31, %c0_32] : memref<1x1x16xf32, #tpu.memory_space<vmem>>, vector<1x1x16xf32>
      tpu.vector_store %arg6[%c0_30, %c0_31, %c0_32], %52 {strides = array<i32>} : memref<1x1x16xf32, #tpu.memory_space<vmem>>, vector<1x1x16xf32>,
      %cst_33 = arith.constant 0.000000e+00 : f32
      %54 = vector.broadcast %cst_33 : f32 to vector<1x1x16xf32>
      %c0_34 = arith.constant 0 : index
      %c0_35 = arith.constant 0 : index
      %c0_36 = arith.constant 0 : index
      %55 = vector.load %arg7[%c0_34, %c0_35, %c0_36] : memref<1x1x16xf32, #tpu.memory_space<vmem>>, vector<1x1x16xf32>
      tpu.vector_store %arg7[%c0_34, %c0_35, %c0_36], %54 {strides = array<i32>} : memref<1x1x16xf32, #tpu.memory_space<vmem>>, vector<1x1x16xf32>,
    } else {
    }
    %c0 = arith.constant 0 : index
    %c0_1 = arith.constant 0 : index
    %c0_2 = arith.constant 0 : index
    %3 = vector.load %arg5[%c0, %c0_1, %c0_2] : memref<1x32x16xf32, #tpu.memory_space<vmem>>, vector<1x32x16xf32>
    %4 = vector.shape_cast %3 : vector<1x32x16xf32> to vector<32x16xf32>
    %c0_3 = arith.constant 0 : index
    %c0_4 = arith.constant 0 : index
    %c0_5 = arith.constant 0 : index
    %5 = vector.load %arg3[%c0_3, %c0_4, %c0_5] : memref<1x1x16xi32, #tpu.memory_space<vmem>>, vector<1x1x16xi32>
    %6 = vector.shape_cast %5 : vector<1x1x16xi32> to vector<1x16xi32>
    %c0_6 = arith.constant 0 : index
    %c0_7 = arith.constant 0 : index
    %c0_8 = arith.constant 0 : index
    %7 = vector.load %arg4[%c0_6, %c0_7, %c0_8] : memref<1x32x1xf32, #tpu.memory_space<vmem>>, vector<1x32x1xf32>
    %8 = vector.shape_cast %7 : vector<1x32x1xf32> to vector<32x1xf32>
    %cst = arith.constant dense<0xFF800000> : vector<16xf32>
    %9 = vector.multi_reduction <maximumf>, %4, %cst [0] : vector<32x16xf32> to vector<16xf32>
    %10 = vector.shape_cast %9 : vector<16xf32> to vector<1x16xf32>
    %11 = vector.broadcast %10 : vector<1x16xf32> to vector<32x16xf32>
    %12 = arith.subf %4, %11 : vector<32x16xf32>
    %13 = math.exp %12 : vector<32x16xf32>
    %cst_9 = arith.constant dense<0.000000e+00> : vector<16xf32>
    %14 = vector.multi_reduction <add>, %13, %cst_9 [0] : vector<32x16xf32> to vector<16xf32>
    %15 = vector.shape_cast %14 : vector<16xf32> to vector<1x16xf32>
    %16 = tpu.iota {dimensions = array<i32: 0>} : vector<32x16xi32>
    %17 = vector.broadcast %6 : vector<1x16xi32> to vector<32x16xi32>
    %18 = arith.cmpi eq, %16, %17 : vector<32x16xi32>
    %cst_10 = arith.constant 0.000000e+00 : f32
    %19 = vector.broadcast %cst_10 : f32 to vector<32x16xf32>
    %20 = arith.select %18, %12, %19 : vector<32x16xi1>, vector<32x16xf32>
    %cst_11 = arith.constant dense<0.000000e+00> : vector<16xf32>
    %21 = vector.multi_reduction <add>, %20, %cst_11 [0] : vector<32x16xf32> to vector<16xf32>
    %22 = vector.shape_cast %21 : vector<16xf32> to vector<1x16xf32>
    %23 = math.log %15 : vector<1x16xf32>
    %24 = arith.subf %23, %22 : vector<1x16xf32>
    %cst_12 = arith.constant 1.000000e+00 : f32
    %25 = vector.broadcast %cst_12 : f32 to vector<32x1xf32>
    %26 = arith.subf %25, %8 : vector<32x1xf32>
    %27 = vector.broadcast %26 : vector<32x1xf32> to vector<32x16xf32>
    %28 = arith.mulf %13, %27 : vector<32x16xf32>
    %cst_13 = arith.constant dense<0.000000e+00> : vector<16xf32>
    %29 = vector.multi_reduction <add>, %28, %cst_13 [0] : vector<32x16xf32> to vector<16xf32>
    %30 = vector.shape_cast %29 : vector<16xf32> to vector<1x16xf32>
    %31 = arith.divf %30, %15 : vector<1x16xf32>
    %32 = tpu.iota {dimensions = array<i32: 1>} : vector<1x16xi32>
    %c1_i32 = arith.constant 1 : i32
    %33 = arith.muli %arg1, %c1_i32 : i32
    %34 = arith.addi %33, %arg2 : i32
    %c16_i32 = arith.constant 16 : i32
    %35 = arith.muli %34, %c16_i32 : i32
    %36 = vector.broadcast %35 : i32 to vector<1x16xi32>
    %37 = arith.addi %36, %32 : vector<1x16xi32>
    %c16_i32_14 = arith.constant 16 : i32
    %38 = vector.broadcast %c16_i32_14 : i32 to vector<1x16xi32>
    %39 = arith.cmpi slt, %37, %38 : vector<1x16xi32>
    %c0_15 = arith.constant 0 : index
    %c0_16 = arith.constant 0 : index
    %c0_17 = arith.constant 0 : index
    %40 = vector.load %arg6[%c0_15, %c0_16, %c0_17] : memref<1x1x16xf32, #tpu.memory_space<vmem>>, vector<1x1x16xf32>
    %cst_18 = arith.constant 0.000000e+00 : f32
    %41 = vector.broadcast %cst_18 : f32 to vector<1x16xf32>
    %42 = arith.select %39, %24, %41 : vector<1x16xi1>, vector<1x16xf32>
    %43 = vector.shape_cast %42 : vector<1x16xf32> to vector<1x1x16xf32>
    %44 = arith.addf %40, %43 : vector<1x1x16xf32>
    %c0_19 = arith.constant 0 : index
    %c0_20 = arith.constant 0 : index
    %c0_21 = arith.constant 0 : index
    %45 = vector.load %arg6[%c0_19, %c0_20, %c0_21] : memref<1x1x16xf32, #tpu.memory_space<vmem>>, vector<1x1x16xf32>
    tpu.vector_store %arg6[%c0_19, %c0_20, %c0_21], %44 {strides = array<i32>} : memref<1x1x16xf32, #tpu.memory_space<vmem>>, vector<1x1x16xf32>,
    %c0_22 = arith.constant 0 : index
    %c0_23 = arith.constant 0 : index
    %c0_24 = arith.constant 0 : index
    %46 = vector.load %arg7[%c0_22, %c0_23, %c0_24] : memref<1x1x16xf32, #tpu.memory_space<vmem>>, vector<1x1x16xf32>
    %cst_25 = arith.constant 0.000000e+00 : f32
    %47 = vector.broadcast %cst_25 : f32 to vector<1x16xf32>
    %48 = arith.select %39, %31, %47 : vector<1x16xi1>, vector<1x16xf32>
    %49 = vector.shape_cast %48 : vector<1x16xf32> to vector<1x1x16xf32>
    %50 = arith.addf %46, %49 : vector<1x1x16xf32>
    %c0_26 = arith.constant 0 : index
    %c0_27 = arith.constant 0 : index
    %c0_28 = arith.constant 0 : index
    %51 = vector.load %arg7[%c0_26, %c0_27, %c0_28] : memref<1x1x16xf32, #tpu.memory_space<vmem>>, vector<1x1x16xf32>
    tpu.vector_store %arg7[%c0_26, %c0_27, %c0_28], %50 {strides = array<i32>} : memref<1x1x16xf32, #tpu.memory_space<vmem>>, vector<1x1x16xf32>,
    return
  }
  func.func @transform_0(%arg0: i32, %arg1: i32, %arg2: i32) -> (i32, i32, i32) {
    %c1_i32 = arith.constant 1 : i32
    %0 = arith.muli %arg1, %c1_i32 : i32
    %1 = arith.addi %0, %arg2 : i32
    %c0_i32 = arith.constant 0 : i32
    %c0_i32_0 = arith.constant 0 : i32
    return %arg0, %c0_i32, %1 : i32, i32, i32
  }
  func.func @transform_1(%arg0: i32, %arg1: i32, %arg2: i32) -> (i32, i32, i32) {
    %c0_i32 = arith.constant 0 : i32
    %c0_i32_0 = arith.constant 0 : i32
    %c0_i32_1 = arith.constant 0 : i32
    return %arg0, %c0_i32, %c0_i32_0 : i32, i32, i32
  }
  func.func @transform_2(%arg0: i32, %arg1: i32, %arg2: i32) -> (i32, i32, i32) {
    %c1_i32 = arith.constant 1 : i32
    %0 = arith.muli %arg1, %c1_i32 : i32
    %1 = arith.addi %0, %arg2 : i32
    %c0_i32 = arith.constant 0 : i32
    %c0_i32_0 = arith.constant 0 : i32
    return %arg0, %c0_i32, %1 : i32, i32, i32
  }
  func.func @transform_3(%arg0: i32, %arg1: i32, %arg2: i32) -> (i32, i32, i32) {
    %c1_i32 = arith.constant 1 : i32
    %0 = arith.muli %arg0, %c1_i32 : i32
    %1 = arith.addi %0, %arg1 : i32
    %c0_i32 = arith.constant 0 : i32
    %c0_i32_0 = arith.constant 0 : i32
    %c0_i32_1 = arith.constant 0 : i32
    return %1, %c0_i32, %c0_i32_0 : i32, i32, i32
  }
  func.func @transform_4(%arg0: i32, %arg1: i32, %arg2: i32) -> (i32, i32, i32) {
    %c1_i32 = arith.constant 1 : i32
    %0 = arith.muli %arg0, %c1_i32 : i32
    %1 = arith.addi %0, %arg1 : i32
    %c0_i32 = arith.constant 0 : i32
    %c0_i32_0 = arith.constant 0 : i32
    %c0_i32_1 = arith.constant 0 : i32
    return %1, %c0_i32, %c0_i32_0 : i32, i32, i32
  }
}

</mosaic_0001>

<bundles_post_ra>
// kernel: tpu_custom_call.1
= control target key start
LH: loop header
LB: loop body
LE: loop exit
PB: predicated region body
PF: predicated region fallthrough
CT: control target
= control target key end

     0   :  { %10 = vsyncpa [#allocation3], 0  ;;  %s1025_s0 = inlined_call_operand.vmem [shape: s32[2,1,16], index: 0, kind: input, shape index: {}]   ;;  %s1026_s1 = inlined_call_operand.vmem [shape: f32[2,32,1], index: 1, kind: input, shape index: {}]   ;;  %s1027_s2 = inlined_call_operand.vmem [shape: f32[2,32,16], index: 2, kind: input, shape index: {}]   ;;  %s1028_s3 = inlined_call_operand.hbm [shape: f32[2,1,16], index: 3, kind: output, shape index: {0}]   ;;  %s1029_s4 = inlined_call_operand.hbm [shape: f32[2,1,16], index: 4, kind: output, shape index: {1}]  }
   0x1   :  { %12 = vsyncpa [#allocation3 + $0x1], 0 }
   0x2   :  { %13 = vsyncpa [#allocation5], 0 }
   0x3   :  { %15 = vsyncpa [#allocation5 + $0x1], 0  ;;  %s834_s15 = smov 0   ;;  %s836_s16 = smov 0  }
   0x4   :  { %s838_s17 = smov 0   ;;  %s840_s18 = smov 0  }
   0x5   :  { %s842_s19 = smov 0   ;;  %s844_s20 = smov 0  }
   0x6 LB: > { %s605_s21 = sadd.s32 4294967295, %s803_s20   ;;  %s606_s22 = sadd.s32 4294967294, %s803_s20   ;;  %s803_s20 = sphi %s844_s20, %s21_s20   ;;  %s799_s19 = sphi %s842_s19, %s1036_s19   ;;  %s795_s18 = sphi %s840_s18, %s1035_s18   ;;  %s791_s17 = sphi %s838_s17, %s1034_s17   ;;  %s787_s16 = sphi %s836_s16, %s1033_s16   ;;  %s783_s15 = sphi %s834_s15, %s1032_s15  }
   0x7   : > { %s40_s23 = sadd.s32 1, %s799_s19  ;;  %s135_s24 = sadd.s32 1, %s791_s17 }
   0x8   : > { %p42_p0 = scmp.ge.s32.totalorder %s40_s23, 2  ;;  %p145_p1 = scmp.ne.s32.totalorder %s791_s17, %s787_s16 }
   0x9   : > { %p146_p2 = scmp.eq.s32.totalorder %s605_s21, 1  ;;  %p151_p3 = scmp.ne.s32.totalorder %s787_s16, %s783_s15 }
   0xa   : > { %s1038_s23 = smov (%p42_p0, %s40_s23), 0  ;;  %p152_p5 = scmp.eq.s32.totalorder %s606_s22, 1 }
   0xb   : > { %p874_p4 = por %p146_p2, %p145_p1  ;;  %s132_s26 = ssub.s32 %s799_s19, %s1038_s23 }
   0xc   : > { %p609_p6 = scmp.ge.s32.totalorder %s803_s20, 1  ;;  %p133_p7 = scmp.eq.s32.totalorder %s132_s26, 0 }
   0xd   : > { %p881_p8 = por %p152_p5, %p151_p3  ;;  %p230_p9 = scmp.lt.s32.totalorder %s803_s20, 3 }
   0xe   : > { %s887_s28 = scalar_select %p133_p7, %s791_s17, %s135_s24  }
   0xf   : > { %p231_p10 = pnand %p609_p6, %p230_p9 }
  0x10   : > { %p276_p11 = scmp.lt.s32.totalorder (!%p231_p10), %s795_s18, 1  ;;  %s905_s11 = sand.u32 (!%p231_p10), 1, %s787_s16  }
  0x11   : > { %234 = sbr.rel (%p231_p10) target bundleno = 197 (0xc5), region = 32  ;;  %s908_s12 = scalar_lea.vmem (!%p231_p10), [#allocation2], %s905_s11 }
  0x12   : > { %s913_s13 = scalar_lea.vmem (!%p231_p10), [#allocation4], %s905_s11  ;;  %s615_s24 = sshll.u32 (!%p231_p10), %s795_s18, 4 }
  0x13   : > { %s465_s26 = sshll.u32 (!%p231_p10), %s908_s12, 4  ;;  %s463_s5 = scalar_lea.hbm (!%p231_p10), %s1028_s3, %s615_s24  ;;  %s466_s26 = int_to_ptr.vmem [resolvable:$true] %s465_s26 }
  0x14   : > { %s448_s6 = scalar_lea.sflag (!%p231_p10), [#allocation3], %s905_s11  ;;  %s807_s8 = smov (!%p231_p10), [#allocation2]  }
  0x15   : > { %s701_s9 = sshll.u32 (!%p231_p10), %s807_s8, 4  ;;  %s702_s9 = int_to_ptr.vmem [resolvable:$false] %s701_s9 }
  0x16   : > { %v805_v0 = vmov 0   ;;  %s891_s29 = scalar_select %p276_p11, %s795_s18, 1  ;;  %vm316_vm0 = vcmask 130048   ;;  %v355_v26 = vlaneseq  ;;  %vm304_vm1 = vcmask 122880  }
  0x17   : > { %684 = vset.pattern.permute.xlu1 %v805_v0  ;;  %683 = vset.pattern.permute.xlu0 %v805_v0  ;;  %v806_v33 = vmov 0.0   ;;  %p704_p1 = scmp.lt.s32.totalorder %s466_s26, %s702_s9 }
  0x18   : > { %s619_s30 = sshll.u32 %s891_s29, 5  ;;  %305 = vst.msk [vmem:[%s908_s12] sm:$0x1] %vm304_vm1, %v806_v33  ;;  %306 = vst.msk [vmem:[%s913_s13] sm:$0x1] %vm304_vm1, %v806_v33  ;;  %v356_v36 = vshrl.u32 %v355_v26, 7  ;;  %s281_s22 = scalar_lea.vmem %s1025_s0, %s891_s29 }
  0x19   : > { %s287_s7 = scalar_lea.vmem %s1026_s1, %s619_s30  ;;  %s296_s10 = scalar_lea.vmem %s1027_s2, %s619_s30  ;;  %v614_v38 = vld [vmem:[%s281_s22] ss:$0 sm:$0xff] }
  0x1a   : > { %v307_v1 = vld [vmem:[%s296_s10] sm:$0xff]  ;;  %v308_v2 = vld [vmem:[%s296_s10 + $0x8] sm:$0xff]  ;;  %v309_v3 = vld [vmem:[%s296_s10 + $0x10] sm:$0xff]  ;;  %v357_v37 = vadd.s32 8, %v356_v36  ;;  %v358_v39 = vadd.s32 16, %v356_v36  ;;  %vm364_vm2 = vcmp.eq.s32.totalorder %v356_v36, %v614_v38  ;;  %v359_v42 = vadd.s32 24, %v356_v36 }
  0x1b   : > { %v310_v4 = vld [vmem:[%s296_s10 + $0x18] sm:$0xff]  ;;  %v314_v5 = vld [vmem:[%s287_s7 + $0x10] sm:$0xff]  ;;  %v317_v6 = vsel %vm316_vm0, %v307_v1, -inf  ;;  %v318_v7 = vsel %vm316_vm0, %v308_v2, -inf  ;;  %v319_v8 = vsel %vm316_vm0, %v309_v3, -inf  ;;  %v312_v9 = vld [vmem:[%s287_s7] sm:$0xff] }
  0x1c   : > { %v320_v10 = vsel %vm316_vm0, %v310_v4, -inf  ;;  %v321_v11 = vmax.f32 %v317_v6, %v318_v7  ;;  %v390_v12 = vsub.f32 1.0, %v314_v5  ;;  %v388_v13 = vsub.f32 1.0, %v312_v9  ;;  %v315_v14 = vld [vmem:[%s287_s7 + $0x18] sm:$0xff]  ;;  %v313_v15 = vld [vmem:[%s287_s7 + $0x8] sm:$0xff]  ;;  %s697_s7 = scalar_lea.vmem %s466_s26, 16 }
  0x1d   : > { %v322_v16 = vmax.f32 %v319_v8, %v320_v10  ;;  %v391_v17 = vsub.f32 1.0, %v315_v14  ;;  %v389_v18 = vsub.f32 1.0, %v313_v15  ;;  %vm365_vm3 = vcmp.eq.s32.totalorder %v357_v37, %v614_v38  ;;  %p698_p12 = scmp.ne.s32.totalorder %s466_s26, %s697_s7  ;;  %s703_s10 = scalar_lea.vmem %s702_s9, 32 }
  0x1e   : > { %404 = vperm.xlu1 %684, %v390_v12   ;;  %394 = vperm.xlu0 %683, %v388_v13   ;;  %vm366_vm4 = vcmp.eq.s32.totalorder %v358_v39, %v614_v38  ;;  %vm367_vm5 = vcmp.eq.s32.totalorder %v359_v42, %v614_v38  ;;  %v943_v10 = vand.u32 127, %v355_v26  ;;  %p705_p2 = scmp.lt.s32.totalorder %s703_s10, %s697_s7 }
  0x1f   : > { %v323_v19 = vmax.f32 %v321_v11, %v322_v16  ;;  %v438_v15 = vld [vmem:[%s908_s12] sm:$0x1]  ;;  %p699_p13 = pnand %p698_p12, %p874_p4 }
  0x20   : > { %vm437_vm6 = vcmp.lt.s32.totalorder %v943_v10, 16  ;;  %p706_p3 = por %p705_p2, %p704_p1 }
  0x21   : > { %v324_v20 = vrot.slane %v323_v19, 4  ;;  %p700_p0 = pneg %p699_p13 }
  0x22   : > { %409 = vperm.xlu1 %684, %v391_v17   ;;  %399 = vperm.xlu0 %683, %v389_v18  }
  0x23   : > { %v325_v21 = vmax.f32 %v323_v19, %v324_v20  ;;  %p707_p5 = pnand %p706_p3, %p700_p0 }
  0x25   : > { %v326_v22 = vrot.slane %v325_v21, 2 }
  0x27   : > { %v327_v23 = vmax.f32 %v325_v21, %v326_v22 }
  0x29   : > { %v328_v24 = vrot.slane %v327_v23, 1 }
  0x2b   : > { %v329_v25 = vmax.f32 %v327_v23, %v328_v24 }
  0x2d   : > { %v330_v27 = vsub.f32 %v307_v1, %v329_v25  ;;  %v331_v28 = vsub.f32 %v308_v2, %v329_v25  ;;  %v332_v29 = vsub.f32 %v309_v3, %v329_v25  ;;  %v333_v30 = vsub.f32 %v310_v4, %v329_v25 }
  0x2f   : > { %v334_v31 = vmul.f32 1.442695, %v330_v27  ;;  %v338_v32 = vmul.f32 1.442695, %v332_v29  ;;  %v340_v34 = vmul.f32 1.442695, %v333_v30 }
  0x30   : > { %v336_v35 = vmul.f32 1.442695, %v331_v28  ;;  %v368_v40 = vsel %vm364_vm2, %v330_v27, 0.0  ;;  %v369_v41 = vsel %vm365_vm3, %v331_v28, 0.0  ;;  %v370_v47 = vsel %vm366_vm4, %v332_v29, 0.0 }
  0x31   : > { %685 = vpow2.f32 %v338_v32  ;;  %v372_v44 = vsel %vm316_vm0, %v368_v40, 0.0  ;;  %v373_v45 = vsel %vm316_vm0, %v369_v41, 0.0  ;;  %v375_v52 = vsel %vm316_vm0, %v370_v47, 0.0 }
  0x32   : > { %687 = vpow2.f32 %v334_v31  ;;  %v374_v51 = vadd.f32 %v373_v45, %v372_v44  ;;  %v371_v55 = vsel %vm367_vm5, %v333_v30, 0.0 }
  0x33   : > { %689 = vpow2.f32 %v340_v34  ;;  %v377_v60 = vsel %vm316_vm0, %v371_v55, 0.0 }
  0x34   : > { %691 = vpow2.f32 %v336_v35  ;;  %v376_v58 = vadd.f32 %v375_v52, %v374_v51 }
  0x36   : > { %v378_v62 = vadd.f32 %v377_v60, %v376_v58 }
  0x38   : > { %v379_v1 = vrot.slane %v378_v62, 4 }
  0x3a   : > { %v380_v4 = vadd.f32 %v379_v1, %v378_v62 }
  0x3c   : > { %v381_v7 = vrot.slane %v380_v4, 2 }
  0x3e   : > { %v922_v43 = vpop.eup %685  ;;  %v382_v8 = vadd.f32 %v381_v7, %v380_v4 }
  0x3f   : > { %v926_v46 = vpop.eup %687  ;;  %v345_v53 = vsel %vm316_vm0, %v922_v43, 0.0 }
  0x40   : > { %v928_v48 = vpop.eup %689  ;;  %v342_v49 = vsel %vm316_vm0, %v926_v46, 0.0  ;;  %v383_v9 = vrot.slane %v382_v8, 1 }
  0x41   : > { %v932_v50 = vpop.eup %691  ;;  %v347_v57 = vsel %vm316_vm0, %v928_v48, 0.0 }
  0x42   : > { %v343_v54 = vsel %vm316_vm0, %v932_v50, 0.0  ;;  %v384_v11 = vadd.f32 %v383_v9, %v382_v8 }
  0x43   : > { %v344_v56 = vadd.f32 %v343_v54, %v342_v49 }
  0x45   : > { %v346_v59 = vadd.f32 %v345_v53, %v344_v56 }
  0x47   : > { %v348_v61 = vadd.f32 %v347_v57, %v346_v59 }
  0x49   : > { %v349_v63 = vrot.slane %v348_v61, 4 }
  0x4b   : > { %v350_v0 = vadd.f32 %v349_v63, %v348_v61 }
  0x4d   : > { %v351_v2 = vrot.slane %v350_v0, 2 }
  0x4f   : > { %v352_v3 = vadd.f32 %v351_v2, %v350_v0 }
  0x51   : > { %v353_v5 = vrot.slane %v352_v3, 1 }
  0x53   : > { %v354_v6 = vadd.f32 %v353_v5, %v352_v3 }
  0x55   : > { %693 = vlog2.f32 %v354_v6 }
  0x62   : > { %v694_v12 = vpop.eup %693 }
  0x63   : > { %v386_v13 = vmul.f32 0.6931472, %v694_v12 }
  0x65   : > { %v387_v14 = vsub.f32 %v386_v13, %v384_v11 }
  0x67   : > { %v439_v16 = vsel %vm437_vm6, %v387_v14, 0.0 }
  0x68   : > { %v440_v17 = vadd.f32 %v439_v16, %v438_v15 }
  0x6a   : > { %442 = vst.msk [vmem:[%s908_s12] sm:$0x1] %vm304_vm1, %v440_v17 }
  0x6b   : > { %710 = shalt.err (!%p707_p5)
}
  0x6c   : > { %s711_s14 = scalar_lea.hbm %s463_s5, 16  ;;  %s715_s22 = scalar_lea.hbm %s1028_s3, 32 }
  0x6d   : > { %p712_p6 = scmp.ne.s32.totalorder %s463_s5, %s711_s14  ;;  %p716_p10 = scmp.lt.s32.totalorder %s463_s5, %s1028_s3 }
  0x6e   : > { %p717_p11 = scmp.lt.s32.totalorder %s715_s22, %s711_s14 }
  0x6f   : > { %p713_p7 = pnand %p712_p6, %p874_p4 }
  0x70   : > { %p718_p12 = por %p717_p11, %p716_p10 }
  0x71   : > { %p714_p9 = pneg %p713_p7 }
  0x73   : > { %p719_p13 = pnand %p718_p12, %p714_p9 }
  0x75   : > { %722 = shalt.err (!%p719_p13)
}
  0x76   : > { %621 = dma.vmem_to_hbm [thread:$0]  (%p874_p4), %s466_s26, 16, %s463_s5, %s448_s6   ;;  %695 = vrcp.f32 %v354_v6  ;;  %v443_v41 = vld [vmem:[%s913_s13] sm:$0x1] }
  0x77   : > { %s479_s26 = sshll.u32 %s913_s13, 4  ;;  %s477_s7 = scalar_lea.hbm %s1029_s4, %s615_s24  ;;  %s480_s26 = int_to_ptr.vmem [resolvable:$true] %s479_s26 }
  0x78   : > { %s452_s8 = scalar_lea.sflag [#allocation5], %s905_s11  ;;  %s723_s9 = scalar_lea.vmem %s480_s26, 16 }
  0x79   : > { %p724_p0 = scmp.ne.s32.totalorder %s480_s26, %s723_s9  ;;  %s808_s10 = smov [#allocation4]  }
  0x7a   : > { %s727_s14 = sshll.u32 %s808_s10, 4  ;;  %s728_s14 = int_to_ptr.vmem [resolvable:$false] %s727_s14 }
  0x7b   : > { %p725_p1 = pnand %p724_p0, %p874_p4  ;;  %s729_s12 = scalar_lea.vmem %s728_s14, 32 }
  0x7c   : > { %p730_p3 = scmp.lt.s32.totalorder %s480_s26, %s728_s14  ;;  %p731_p5 = scmp.lt.s32.totalorder %s729_s12, %s723_s9 }
  0x7d   : > { %p726_p2 = pneg %p725_p1 }
  0x7e   : > { %p732_p6 = por %p731_p5, %p730_p3 }
  0x80   : > { %p733_p7 = pnand %p732_p6, %p726_p2 }
  0x83   : > { %v696_v38 = vpop.eup %695 }
  0x99   : > { %v405_v18 = vpop.permute.xlu1 %404  ;;  %v395_v19 = vpop.permute.xlu0 %394 }
  0x9a   : > { %v412_v20 = vmul.f32 %v926_v46, %v395_v19  ;;  %v414_v23 = vmul.f32 %v922_v43, %v405_v18 }
  0x9c   : > { %v416_v25 = vsel %vm316_vm0, %v412_v20, 0.0  ;;  %v419_v29 = vsel %vm316_vm0, %v414_v23, 0.0 }
  0x9d   : > { %v410_v21 = vpop.permute.xlu1 %409  ;;  %v400_v22 = vpop.permute.xlu0 %399 }
  0x9e   : > { %v413_v24 = vmul.f32 %v932_v50, %v400_v22  ;;  %v415_v26 = vmul.f32 %v928_v48, %v410_v21 }
  0xa0   : > { %v417_v27 = vsel %vm316_vm0, %v413_v24, 0.0  ;;  %v421_v31 = vsel %vm316_vm0, %v415_v26, 0.0 }
  0xa1   : > { %v418_v28 = vadd.f32 %v417_v27, %v416_v25 }
  0xa3   : > { %v420_v30 = vadd.f32 %v419_v29, %v418_v28 }
  0xa5   : > { %v422_v32 = vadd.f32 %v421_v31, %v420_v30 }
  0xa7   : > { %v423_v33 = vrot.slane %v422_v32, 4 }
  0xa9   : > { %v424_v34 = vadd.f32 %v423_v33, %v422_v32 }
  0xab   : > { %v425_v35 = vrot.slane %v424_v34, 2 }
  0xad   : > { %v426_v36 = vadd.f32 %v425_v35, %v424_v34 }
  0xaf   : > { %v427_v37 = vrot.slane %v426_v36, 1 }
  0xb1   : > { %v428_v39 = vadd.f32 %v427_v37, %v426_v36 }
  0xb3   : > { %v430_v40 = vmul.f32 %v696_v38, %v428_v39 }
  0xb5   : > { %v444_v42 = vsel %vm437_vm6, %v430_v40, 0.0 }
  0xb6   : > { %v445_v43 = vadd.f32 %v444_v42, %v443_v41 }
  0xb8   : > { %446 = vst.msk [vmem:[%s913_s13] sm:$0x1] %vm304_vm1, %v445_v43 }
  0xb9   : > { %736 = shalt.err (!%p733_p7)
}
  0xba   : > { %s737_s18 = scalar_lea.hbm %s477_s7, 16  ;;  %s741_s24 = scalar_lea.hbm %s1029_s4, 32 }
  0xbb   : > { %p738_p9 = scmp.ne.s32.totalorder %s477_s7, %s737_s18  ;;  %p742_p12 = scmp.lt.s32.totalorder %s477_s7, %s1029_s4 }
  0xbc   : > { %p743_p13 = scmp.lt.s32.totalorder %s741_s24, %s737_s18 }
  0xbd   : > { %p739_p10 = pnand %p738_p9, %p874_p4 }
  0xbe   : > { %p744_p0 = por %p743_p13, %p742_p12 }
  0xbf   : > { %p740_p11 = pneg %p739_p10 }
  0xc1   : > { %p745_p1 = pnand %p744_p0, %p740_p11 }
  0xc3   : > { %748 = shalt.err (!%p745_p1)
}
  0xc4   : > { %622 = dma.vmem_to_hbm [thread:$0]  (%p874_p4), %s480_s26, 16, %s477_s7, %s452_s8  }
  0xc5 PF: > { %p632_p2 = scmp.ge.s32.totalorder %s803_s20, 2  ;;  %s491_s29 = sand.u32 1, %s783_s15  }
  0xc6   : > { %s492_s30 = scalar_lea.sflag [#allocation3], %s491_s29 }
  0xc7   : > { %p626_p3 = pnand %p632_p2, %p881_p8 }
  0xc9   : > { %p627_p5 = pneg %p626_p3 }
  0xcb   : > { %774 = dma.done.wait (%p627_p5), %s492_s30, 16  }
  0xcc   : > { %776 = vsyncadd (%p627_p5), %s492_s30, 4294967280  ;;  %s500_s5 = scalar_lea.sflag [#allocation5], %s491_s29 }
  0xcd   : > { %778 = dma.done.wait (%p627_p5), %s500_s5, 16  }
  0xce   : > { %780 = vsyncadd (%p627_p5), %s500_s5, 4294967280  ;;  %s21_s20 = sadd.s32 1, %s803_s20   ;;  %s1032_s15 = smov %s787_s16 }
  0xcf   : > { %p18_p6 = scmp.ge.s32.totalorder %s21_s20, 4   ;;  %s1033_s16 = smov %s791_s17 }
  0xd0   : > { %s1034_s17 = smov %s887_s28  ;;  %s1035_s18 = smov %s799_s19 }
  0xd1   : > { %s1036_s19 = smov %s1038_s23  ;;  %20 = sbr.rel (!%p18_p6) target bundleno = 6 (0x6), region = 94 }
  0xd6   :  { %504 = vsyncpa [#allocation3], 1 }
  0xd7   :  { %506 = vsyncpa [#allocation3 + $0x1], 1 }
  0xd8   :  { %507 = vsyncpa [#allocation5], 1 }
  0xd9   :  { %509 = vsyncpa [#allocation5 + $0x1], 1 }

</bundles_post_ra>
